<compile_context>
chip_gen: v5e
topology: v5e:2x2
jax: 0.10.0
libtpu: 0.0.40
codegen_flags: <defaults>
</compile_context>

<pallas_src>
import functools
import math

import jax
import jax.numpy as jnp
from jax.experimental import pallas as pl
from jax.experimental.pallas import tpu as pltpu

_LANE = 128      # lane width (last dim)
_SUBLANE = 8     # sublane width (second-to-last dim)

_VMEM = pl.BlockSpec(memory_space=pltpu.MemorySpace.VMEM)


def _round_up(x, m):
    return ((x + m - 1) // m) * m


# -----------------------------------------------------------------------------
# Kernel 1: one-time batched projection   proj = emb_stacked @ W_T + b
# (single launch for ALL subjects at construction; not in the per-call path)
# -----------------------------------------------------------------------------
def _project_kernel(emb_ref, w_ref, b_ref, out_ref):
    out_ref[...] = (
        jnp.dot(emb_ref[...], w_ref[...], preferred_element_type=jnp.float32)
        + b_ref[...]
    )


def _project(emb_padded, w_padded, b_padded):
    n_pad = emb_padded.shape[0]
    d_pad = w_padded.shape[1]
    return pl.pallas_call(
        _project_kernel,
        out_shape=jax.ShapeDtypeStruct((n_pad, d_pad), jnp.float32),
        in_specs=[_VMEM, _VMEM, _VMEM],
        out_specs=_VMEM,
    )(emb_padded, w_padded, b_padded)


# -----------------------------------------------------------------------------
# Kernel 2: per-call row gather via one-hot MXU pass
#   perm_ref : (m_pad, 1)      int32 VMEM   (already clamped / zero-padded)
#   table_ref: (n_pad, d_pad)  f32   VMEM   (cached projected table, n_pad % 128 == 0)
#   out_ref  : (m_pad, d_pad)  f32   VMEM   (lane-dense, full-vreg stores)
# -----------------------------------------------------------------------------
def _gather_kernel(perm_ref, table_ref, out_ref):
    m_pad = out_ref.shape[0]
    n_pad = table_ref.shape[0]
    col = jax.lax.broadcasted_iota(jnp.int32, (m_pad, n_pad), 1)
    one_hot = (col == perm_ref[...]).astype(table_ref.dtype)   # (m_pad, n_pad)
    out_ref[...] = jnp.dot(
        one_hot, table_ref[...], preferred_element_type=jnp.float32
    ).astype(out_ref.dtype)


@functools.partial(jax.jit, static_argnames=("n_valid", "d_out"))
def _gather_rows(perm, table_padded, *, n_valid, d_out):
    """Single-dispatch permuted lookup: clamp + pad + pallas gather + un-pad."""
    m = perm.shape[0]
    m_pad = _round_up(max(m, 1), _SUBLANE)
    # OOB VMEM reads are unchecked on TPU; clamp defensively (PyTorch would
    # raise on an out-of-range index instead).
    perm = jnp.clip(perm.astype(jnp.int32), 0, n_valid - 1)
    perm_p = jnp.pad(perm, (0, m_pad - m)).reshape(m_pad, 1)

    n_pad, d_pad = table_padded.shape
    out = pl.pallas_call(
        _gather_kernel,
        out_shape=jax.ShapeDtypeStruct((m_pad, d_pad), table_padded.dtype),
        in_specs=[_VMEM, _VMEM],
        out_specs=_VMEM,
    )(perm_p, table_padded)
    # Row + lane un-padding stays inside this jit, so it fuses with the kernel
    # call instead of being a separate dispatch / extra HBM round trip.
    return out[:m, :d_out]


# -----------------------------------------------------------------------------
# Module
# -----------------------------------------------------------------------------
class ElectrodeEmbeddings:
    """JAX/Pallas port of the PyTorch ElectrodeEmbeddings module (forward only)."""

    def __init__(self, config, subjects, embedding_dim=None, key=None):
        # subjects: dict subject_id -> n_electrodes
        self.config = config
        self.subjects = subjects
        self.embedding_dim = (
            embedding_dim if embedding_dim is not None else config["d_model"]
        )
        key = key if key is not None else jax.random.PRNGKey(0)

        # Per-subject electrode embedding tables.
        self.electrode_emb = {}
        for subject_id, n_elec in subjects.items():
            key, sub = jax.random.split(key)
            if config["electrode_embedding"] == "zeros":
                tab = jnp.zeros((n_elec, self.embedding_dim), jnp.float32)
            elif config["electrode_embedding"] == "normal":
                tab = (
                    jax.random.normal(sub, (n_elec, self.embedding_dim), jnp.float32)
                    / self.embedding_dim ** 0.5
                )
            else:
                raise ValueError(config["electrode_embedding"])
            self.electrode_emb[str(subject_id)] = tab

        # Optional linear projection embedding_dim -> d_model.
        self.has_linear = self.embedding_dim < config["d_model"]
        if self.has_linear:
            d_model = config["d_model"]
            key, kw, kb = jax.random.split(key, 3)
            bound = 1.0 / math.sqrt(self.embedding_dim)  # PyTorch Linear default init
            w = jax.random.uniform(
                kw, (d_model, self.embedding_dim), jnp.float32, -bound, bound
            )
            b = jax.random.uniform(kb, (d_model,), jnp.float32, -bound, bound)
            self.linear_w_t = jnp.transpose(w)   # (embedding_dim, d_model)
            self.linear_b = b                    # (d_model,)
            self.d_out = d_model
        else:
            self.d_out = self.embedding_dim

        # ------------------------------------------------------------------
        # Precompute / cache the projected tables (perm commutes with the
        # row-wise linear, so this has no permutation dependence).  All
        # subjects go through ONE batched projection kernel launch.
        # Table rows are padded to a multiple of 128 so the per-call one-hot
        # gather has an MXU-aligned contraction dim on all TPU generations.
        # ------------------------------------------------------------------
        e = self.embedding_dim
        d_pad = _round_up(self.d_out, _LANE)

        layout = []   # (sid, row_offset, n_pad, n)
        off = 0
        for sid, emb in self.electrode_emb.items():
            n = emb.shape[0]
            n_pad = _round_up(max(n, 1), _LANE)
            layout.append((sid, off, n_pad, n))
            off += n_pad

        if self.has_linear:
            e_pad = _round_up(e, _LANE)
            emb_stack = jnp.concatenate(
                [
                    jnp.pad(self.electrode_emb[sid], ((0, n_pad - n), (0, e_pad - e)))
                    for sid, _, n_pad, n in layout
                ],
                axis=0,
            )
            w_p = jnp.pad(self.linear_w_t, ((0, e_pad - e), (0, d_pad - self.d_out)))
            b_p = jnp.pad(
                self.linear_b.reshape(1, -1), ((0, 0), (0, d_pad - self.d_out))
            )
            proj_stack = _project(emb_stack, w_p, b_p)   # one Pallas matmul, all subjects
        else:
            proj_stack = jnp.concatenate(
                [
                    jnp.pad(self.electrode_emb[sid], ((0, n_pad - n), (0, d_pad - e)))
                    for sid, _, n_pad, n in layout
                ],
                axis=0,
            )

        self._table = {}          # unpadded (n, d_out)    -> fast path (perm=None)
        self._table_padded = {}   # padded   (n_pad, d_pad) -> gather kernel input
        for sid, o, n_pad, n in layout:
            tp = proj_stack[o:o + n_pad]
            self._table_padded[sid] = tp
            self._table[sid] = tp[:n, : self.d_out]

    def __call__(self, subject_id, permutation=None):
        sid = str(subject_id)
        if permutation is None:
            # Gather + projection collapse to the cached table: no kernel launch.
            return self._table[sid]

        n = self.electrode_emb[sid].shape[0]
        perm = jnp.asarray(permutation, dtype=jnp.int32).reshape(-1)
        return _gather_rows(
            perm, self._table_padded[sid], n_valid=n, d_out=self.d_out
        )


if __name__ == "__main__":
    config = {
        "d_model": 64,
        "electrode_embedding": "normal",
        "electrode_embedding_grad": True,
    }
    subjects = {"subj_a": 16, "subj_b": 8}   # subject_id -> n_electrodes
    embedding_dim = 32                       # < d_model -> linear path active

    module = ElectrodeEmbeddings(
        config, subjects, embedding_dim=embedding_dim, key=jax.random.PRNGKey(0)
    )

    # Permuted forward for subject "subj_a" (exercises the one-hot gather kernel).
    perm = jax.random.permutation(
        jax.random.PRNGKey(0), subjects["subj_a"]
    ).astype(jnp.int32)
    out = jax.block_until_ready(module("subj_a", permutation=perm))

    emb_a = module.electrode_emb["subj_a"]
    ref = emb_a[perm] @ module.linear_w_t + module.linear_b
    assert out.shape == (subjects["subj_a"], config["d_model"])
    assert jnp.allclose(out, ref, atol=1e-4, rtol=1e-4), float(
        jnp.max(jnp.abs(out - ref))
    )

    # No-permutation fast path (cached projected table, no kernel launch).
    out2 = jax.block_until_ready(module("subj_b"))
    ref2 = module.electrode_emb["subj_b"] @ module.linear_w_t + module.linear_b
    assert out2.shape == (subjects["subj_b"], config["d_model"])
    assert jnp.allclose(out2, ref2, atol=1e-4, rtol=1e-4)

    # Identity path (embedding_dim == d_model): forward is a pure row gather.
    module_id = ElectrodeEmbeddings(
        config, subjects, embedding_dim=config["d_model"], key=jax.random.PRNGKey(1)
    )
    perm_b = jax.random.permutation(
        jax.random.PRNGKey(2), subjects["subj_b"]
    ).astype(jnp.int32)
    out3 = jax.block_until_ready(module_id("subj_b", permutation=perm_b))
    ref3 = module_id.electrode_emb["subj_b"][perm_b]
    assert out3.shape == (subjects["subj_b"], config["d_model"])
    assert jnp.allclose(out3, ref3)

    print("KERNEL_OK")
</pallas_src>

<mosaic_0001>
module attributes {stable_mosaic.version = 11 : i64} {
  func.func @_project_kernel(%arg0: memref<256x128xf32, #tpu.memory_space<vmem>>, %arg1: memref<128x128xf32, #tpu.memory_space<vmem>>, %arg2: memref<1x128xf32, #tpu.memory_space<vmem>>, %arg3: memref<256x128xf32, #tpu.memory_space<vmem>>) attributes {dimension_semantics = [], scalar_prefetch = 0 : i64, scratch_operands = 0 : i64, tpu.core_type = #tpu.core_type<tc>} {
    %c0 = arith.constant 0 : index
    %c0_0 = arith.constant 0 : index
    %0 = vector.load %arg0[%c0, %c0_0] : memref<256x128xf32, #tpu.memory_space<vmem>>, vector<256x128xf32>
    %c0_1 = arith.constant 0 : index
    %c0_2 = arith.constant 0 : index
    %1 = vector.load %arg1[%c0_1, %c0_2] : memref<128x128xf32, #tpu.memory_space<vmem>>, vector<128x128xf32>
    %cst = arith.constant dense<0.000000e+00> : vector<256x128xf32>
    %2 = tpu.matmul %0, %1, %cst {dimension_numbers = #tpu.dot_dimension_numbers<[1], [0], [0], [1], [0, 0, 1, 1], [], []>} : vector<256x128xf32>, vector<128x128xf32>, vector<256x128xf32> -> vector<256x128xf32>
    %c0_3 = arith.constant 0 : index
    %c0_4 = arith.constant 0 : index
    %3 = vector.load %arg2[%c0_3, %c0_4] : memref<1x128xf32, #tpu.memory_space<vmem>>, vector<1x128xf32>
    %4 = vector.broadcast %3 : vector<1x128xf32> to vector<256x128xf32>
    %5 = arith.addf %2, %4 : vector<256x128xf32>
    %c0_5 = arith.constant 0 : index
    %c0_6 = arith.constant 0 : index
    %6 = vector.load %arg3[%c0_5, %c0_6] : memref<256x128xf32, #tpu.memory_space<vmem>>, vector<256x128xf32>
    tpu.vector_store %arg3[%c0_5, %c0_6], %5 {strides = array<i32>} : memref<256x128xf32, #tpu.memory_space<vmem>>, vector<256x128xf32>,
    return
  }
}

</mosaic_0001>

<bundles_post_ra>
// kernel: tpu_custom_call.1
= control target key start
LH: loop header
LB: loop body
LE: loop exit
PB: predicated region body
PF: predicated region fallthrough
CT: control target
= control target key end

     0   :  { %8 = vsyncpa [#allocation3], 0  ;;  %s476_s0 = inlined_call_operand.hbm [shape: f32[256,128], index: 0, kind: input, shape index: {}]   ;;  %s477_s1 = inlined_call_operand.hbm [shape: f32[128,128], index: 1, kind: input, shape index: {}]   ;;  %s478_s2 = inlined_call_operand.vmem [shape: f32[1,128], index: 2, kind: input, shape index: {}]   ;;  %s479_s3 = inlined_call_operand.hbm [shape: f32[256,128], index: 3, kind: output, shape index: {}]  }
   0x1   :  { %9 = vsyncpa [#allocation6], 0 }
   0x2   :  { %10 = vsyncpa [#allocation4], 0  ;;  %s15_s14 = sshll.u32 %s476_s0, 4  ;;  %s396_s15 = smov [#allocation2]   ;;  %s16_s14 = int_to_ptr.hbm [resolvable:$true] %s15_s14 }
   0x3   :  { %s17_s16 = sshll.u32 %s396_s15, 4  ;;  %s28_s19 = sshll.u32 %s477_s1, 4  ;;  %s18_s16 = int_to_ptr.vmem [resolvable:$true] %s17_s16  ;;  %s29_s19 = int_to_ptr.hbm [resolvable:$true] %s28_s19 }
   0x4   :  { %s397_s20 = smov 128   ;;  %s398_s21 = smov 8  }
   0x5   :  { %23 = dma.hbm_to_vmem [thread:$0]  %s16_s14, 4096, %s18_s16, [#allocation3], %s397_s20, %s397_s20, %s398_s21  }
   0x6   :  { %s399_s22 = smov [#allocation5]  }
   0x7   :  { %s30_s23 = sshll.u32 %s399_s22, 4  ;;  %s31_s23 = int_to_ptr.vmem [resolvable:$true] %s30_s23 }
   0x8   :  { %36 = dma.hbm_to_vmem [thread:$0]  %s29_s19, 2048, %s31_s23, [#allocation6], %s397_s20, %s397_s20, %s398_s21  }
   0x9   :  { %390 = dma.done.wait [#allocation3], 4096  }
   0xa   :  { %391 = vsyncadd [#allocation3], 4294963200 }
   0xb   :  { %392 = dma.done.wait [#allocation6], 2048  }
   0xc   :  { %393 = vsyncadd [#allocation6], 4294965248  ;;  %v94_v0 = vld [vmem:[#allocation5 + $0x78] sm:$0xff]  ;;  %v93_v1 = vld [vmem:[#allocation5 + $0x70] sm:$0xff]  ;;  %s250_s27 = sshll.u32 %s479_s3, 4  ;;  %s251_s27 = int_to_ptr.hbm [resolvable:$true] %s250_s27 }
   0xd   :  { %265 = vmatpush.msra.mxu2 %v94_v0  ;;  %266 = vmatpush.msra.mxu3 %v94_v0  ;;  %v92_v2 = vld [vmem:[#allocation5 + $0x68] sm:$0xff]  ;;  %v91_v3 = vld [vmem:[#allocation5 + $0x60] sm:$0xff]  ;;  %v90_v4 = vld [vmem:[#allocation5 + $0x58] sm:$0xff] }
   0xe   :  { %99 = vmatpush.msra.mxu0 %v94_v0  ;;  %264 = vmatpush.msra.mxu1 %v94_v0  ;;  %v89_v5 = vld [vmem:[#allocation5 + $0x50] sm:$0xff]  ;;  %v88_v6 = vld [vmem:[#allocation5 + $0x48] sm:$0xff]  ;;  %v87_v7 = vld [vmem:[#allocation5 + $0x40] sm:$0xff] }
   0xf   :  { %268 = vmatpush.msra.mxu2 %v93_v1  ;;  %269 = vmatpush.msra.mxu3 %v93_v1  ;;  %v86_v8 = vld [vmem:[#allocation5 + $0x38] sm:$0xff]  ;;  %v85_v9 = vld [vmem:[#allocation5 + $0x30] sm:$0xff]  ;;  %v84_v10 = vld [vmem:[#allocation5 + $0x28] sm:$0xff] }
  0x10   :  { %100 = vmatpush.msra.mxu0 %v93_v1  ;;  %267 = vmatpush.msra.mxu1 %v93_v1  ;;  %v83_v11 = vld [vmem:[#allocation5 + $0x20] sm:$0xff]  ;;  %v82_v12 = vld [vmem:[#allocation5 + $0x18] sm:$0xff]  ;;  %v81_v13 = vld [vmem:[#allocation5 + $0x10] sm:$0xff] }
  0x11   :  { %271 = vmatpush.msra.mxu2 %v92_v2  ;;  %272 = vmatpush.msra.mxu3 %v92_v2  ;;  %v80_v14 = vld [vmem:[#allocation5 + $0x8] sm:$0xff]  ;;  %v79_v15 = vld [vmem:[#allocation5] sm:$0xff]  ;;  %v65_v24 = vld [vmem:[#allocation2 + $0x90] sm:$0xff] }
  0x12   :  { %101 = vmatpush.msra.mxu0 %v92_v2  ;;  %270 = vmatpush.msra.mxu1 %v92_v2  ;;  %v63_v16 = vld [vmem:[#allocation2 + $0x80] sm:$0xff]  ;;  %v64_v20 = vld [vmem:[#allocation2 + $0x88] sm:$0xff]  ;;  %v73_v25 = vld [vmem:[#allocation2 + $0xd0] sm:$0xff] }
  0x13   :  { %274 = vmatpush.msra.mxu2 %v91_v3  ;;  %275 = vmatpush.msra.mxu3 %v91_v3  ;;  %v71_v17 = vld [vmem:[#allocation2 + $0xc0] sm:$0xff]  ;;  %v72_v21 = vld [vmem:[#allocation2 + $0xc8] sm:$0xff]  ;;  %v49_v26 = vld [vmem:[#allocation2 + $0x10] sm:$0xff] }
  0x14   :  { %102 = vmatpush.msra.mxu0 %v91_v3  ;;  %273 = vmatpush.msra.mxu1 %v91_v3  ;;  %v47_v18 = vld [vmem:[#allocation2] sm:$0xff]  ;;  %v48_v22 = vld [vmem:[#allocation2 + $0x8] sm:$0xff]  ;;  %v57_v27 = vld [vmem:[#allocation2 + $0x50] sm:$0xff] }
  0x15   :  { %277 = vmatpush.msra.mxu2 %v90_v4  ;;  %278 = vmatpush.msra.mxu3 %v90_v4  ;;  %v55_v19 = vld [vmem:[#allocation2 + $0x40] sm:$0xff]  ;;  %v56_v23 = vld [vmem:[#allocation2 + $0x48] sm:$0xff]  ;;  %v66_v28 = vld [vmem:[#allocation2 + $0x98] sm:$0xff] }
  0x16   :  { %103 = vmatpush.msra.mxu0 %v90_v4  ;;  %276 = vmatpush.msra.mxu1 %v90_v4  ;;  %v74_v29 = vld [vmem:[#allocation2 + $0xd8] sm:$0xff]  ;;  %v67_v32 = vld [vmem:[#allocation2 + $0xa0] sm:$0xff]  ;;  %v68_v36 = vld [vmem:[#allocation2 + $0xa8] sm:$0xff] }
  0x17   :  { %280 = vmatpush.msra.mxu2 %v89_v5  ;;  %281 = vmatpush.msra.mxu3 %v89_v5  ;;  %v50_v30 = vld [vmem:[#allocation2 + $0x18] sm:$0xff]  ;;  %v75_v33 = vld [vmem:[#allocation2 + $0xe0] sm:$0xff]  ;;  %v76_v37 = vld [vmem:[#allocation2 + $0xe8] sm:$0xff] }
  0x18   :  { %104 = vmatpush.msra.mxu0 %v89_v5  ;;  %279 = vmatpush.msra.mxu1 %v89_v5  ;;  %v58_v31 = vld [vmem:[#allocation2 + $0x58] sm:$0xff]  ;;  %v51_v34 = vld [vmem:[#allocation2 + $0x20] sm:$0xff]  ;;  %v52_v38 = vld [vmem:[#allocation2 + $0x28] sm:$0xff] }
  0x19   :  { %283 = vmatpush.msra.mxu2 %v88_v6  ;;  %284 = vmatpush.msra.mxu3 %v88_v6  ;;  %v59_v35 = vld [vmem:[#allocation2 + $0x60] sm:$0xff]  ;;  %v60_v39 = vld [vmem:[#allocation2 + $0x68] sm:$0xff]  ;;  %v69_v40 = vld [vmem:[#allocation2 + $0xb0] sm:$0xff] }
  0x1a   :  { %105 = vmatpush.msra.mxu0 %v88_v6  ;;  %282 = vmatpush.msra.mxu1 %v88_v6  ;;  %v77_v41 = vld [vmem:[#allocation2 + $0xf0] sm:$0xff]  ;;  %v70_v44 = vld [vmem:[#allocation2 + $0xb8] sm:$0xff]  ;;  %v436_v48 = vld [vmem:[%s478_s2] ss:$0 sm:$0xff]  ;;  %s400_s2 = smov [#allocation7]  }
  0x1b   :  { %286 = vmatpush.msra.mxu2 %v87_v7  ;;  %287 = vmatpush.msra.mxu3 %v87_v7  ;;  %v53_v42 = vld [vmem:[#allocation2 + $0x30] sm:$0xff]  ;;  %v78_v45 = vld [vmem:[#allocation2 + $0xf8] sm:$0xff]  ;;  %s248_s24 = sshll.u32 %s400_s2, 4  ;;  %s249_s24 = int_to_ptr.vmem [resolvable:$true] %s248_s24 }
  0x1c   :  { %106 = vmatpush.msra.mxu0 %v87_v7  ;;  %285 = vmatpush.msra.mxu1 %v87_v7  ;;  %v61_v43 = vld [vmem:[#allocation2 + $0x70] sm:$0xff]  ;;  %v54_v46 = vld [vmem:[#allocation2 + $0x38] sm:$0xff] }
  0x1d   :  { %289 = vmatpush.msra.mxu2 %v86_v8  ;;  %290 = vmatpush.msra.mxu3 %v86_v8  ;;  %v62_v47 = vld [vmem:[#allocation2 + $0x78] sm:$0xff] }
  0x1e   :  { %107 = vmatpush.msra.mxu0 %v86_v8  ;;  %288 = vmatpush.msra.mxu1 %v86_v8 }
  0x1f   :  { %292 = vmatpush.msra.mxu2 %v85_v9  ;;  %293 = vmatpush.msra.mxu3 %v85_v9 }
  0x20   :  { %108 = vmatpush.msra.mxu0 %v85_v9  ;;  %291 = vmatpush.msra.mxu1 %v85_v9 }
  0x21   :  { %295 = vmatpush.msra.mxu2 %v84_v10  ;;  %296 = vmatpush.msra.mxu3 %v84_v10 }
  0x22   :  { %109 = vmatpush.msra.mxu0 %v84_v10  ;;  %294 = vmatpush.msra.mxu1 %v84_v10 }
  0x23   :  { %298 = vmatpush.msra.mxu2 %v83_v11  ;;  %299 = vmatpush.msra.mxu3 %v83_v11 }
  0x24   :  { %110 = vmatpush.msra.mxu0 %v83_v11  ;;  %297 = vmatpush.msra.mxu1 %v83_v11 }
  0x25   :  { %301 = vmatpush.msra.mxu2 %v82_v12  ;;  %302 = vmatpush.msra.mxu3 %v82_v12 }
  0x26   :  { %111 = vmatpush.msra.mxu0 %v82_v12  ;;  %300 = vmatpush.msra.mxu1 %v82_v12 }
  0x27   :  { %304 = vmatpush.msra.mxu2 %v81_v13  ;;  %305 = vmatpush.msra.mxu3 %v81_v13 }
  0x28   :  { %112 = vmatpush.msra.mxu0 %v81_v13  ;;  %303 = vmatpush.msra.mxu1 %v81_v13 }
  0x29   :  { %307 = vmatpush.msra.mxu2 %v80_v14  ;;  %308 = vmatpush.msra.mxu3 %v80_v14 }
  0x2a   :  { %113 = vmatpush.msra.mxu0 %v80_v14  ;;  %306 = vmatpush.msra.mxu1 %v80_v14 }
  0x2b   :  { %310 = vmatpush.msra.mxu2 %v79_v15  ;;  %311 = vmatpush.msra.mxu3 %v79_v15 }
  0x2c   :  { %163 = vmatmul.f32.vlgmr.msra.gmra.mxu2 %v63_v16  ;;  %187 = vmatmul.f32.vlgmr.msra.gmra.mxu3 %v71_v17 }
  0x2d   :  { %114 = vmatpush.msra.mxu0 %v79_v15  ;;  %309 = vmatpush.msra.mxu1 %v79_v15 }
  0x2e   :  { %115 = vmatmul.f32.vlgmr.msra.gmra.mxu0 %v47_v18  ;;  %139 = vmatmul.f32.vlgmr.msra.gmra.mxu1 %v55_v19 }
  0x34   :  { %166 = vmatmul.f32.gmra.mxu2 %v64_v20  ;;  %190 = vmatmul.f32.gmra.mxu3 %v72_v21 }
  0x36   :  { %118 = vmatmul.f32.gmra.mxu0 %v48_v22  ;;  %142 = vmatmul.f32.gmra.mxu1 %v56_v23 }
  0x3c   :  { %169 = vmatmul.f32.gmra.mxu2 %v65_v24  ;;  %193 = vmatmul.f32.gmra.mxu3 %v73_v25 }
  0x3e   :  { %121 = vmatmul.f32.gmra.mxu0 %v49_v26  ;;  %145 = vmatmul.f32.gmra.mxu1 %v57_v27 }
  0x44   :  { %172 = vmatmul.f32.gmra.mxu2 %v66_v28  ;;  %196 = vmatmul.f32.gmra.mxu3 %v74_v29 }
  0x46   :  { %124 = vmatmul.f32.gmra.mxu0 %v50_v30  ;;  %148 = vmatmul.f32.gmra.mxu1 %v58_v31 }
  0x4c   :  { %175 = vmatmul.f32.gmra.mxu2 %v67_v32  ;;  %199 = vmatmul.f32.gmra.mxu3 %v75_v33 }
  0x4e   :  { %127 = vmatmul.f32.gmra.mxu0 %v51_v34  ;;  %151 = vmatmul.f32.gmra.mxu1 %v59_v35 }
  0x54   :  { %178 = vmatmul.f32.gmra.mxu2 %v68_v36  ;;  %202 = vmatmul.f32.gmra.mxu3 %v76_v37 }
  0x56   :  { %130 = vmatmul.f32.gmra.mxu0 %v52_v38  ;;  %154 = vmatmul.f32.gmra.mxu1 %v60_v39 }
  0x5c   :  { %181 = vmatmul.f32.gmra.mxu2 %v69_v40  ;;  %205 = vmatmul.f32.gmra.mxu3 %v77_v41 }
  0x5e   :  { %133 = vmatmul.f32.gmra.mxu0 %v53_v42  ;;  %157 = vmatmul.f32.gmra.mxu1 %v61_v43 }
  0x64   :  { %184 = vmatmul.f32.gmra.mxu2 %v70_v44  ;;  %208 = vmatmul.f32.gmra.mxu3 %v78_v45 }
  0x66   :  { %136 = vmatmul.f32.gmra.mxu0 %v54_v46  ;;  %160 = vmatmul.f32.gmra.mxu1 %v62_v47 }
  0xab   :  { %v116_v49 = vpop.f32.mrf.mxu0  ;;  %v140_v50 = vpop.f32.mrf.mxu1 }
  0xac   :  { %v117_v51 = vadd.f32 %v436_v48, %v116_v49  ;;  %v141_v52 = vadd.f32 %v436_v48, %v140_v50 }
  0xae   :  { %212 = vst [vmem:[#allocation7] sm:$0xff] %v117_v51 }
  0xaf   :  { %220 = vst [vmem:[#allocation7 + $0x40] sm:$0xff] %v141_v52  ;;  %v164_v53 = vpop.f32.mrf.mxu2  ;;  %v188_v54 = vpop.f32.mrf.mxu3 }
  0xb0   :  { %v165_v55 = vadd.f32 %v436_v48, %v164_v53  ;;  %v189_v56 = vadd.f32 %v436_v48, %v188_v54 }
  0xb2   :  { %228 = vst [vmem:[#allocation7 + $0x80] sm:$0xff] %v165_v55 }
  0xb3   :  { %236 = vst [vmem:[#allocation7 + $0xc0] sm:$0xff] %v189_v56  ;;  %v119_v57 = vpop.f32.mrf.mxu0  ;;  %v143_v58 = vpop.f32.mrf.mxu1 }
  0xb4   :  { %v120_v59 = vadd.f32 %v436_v48, %v119_v57  ;;  %v144_v60 = vadd.f32 %v436_v48, %v143_v58 }
  0xb6   :  { %213 = vst [vmem:[#allocation7 + $0x8] sm:$0xff] %v120_v59 }
  0xb7   :  { %221 = vst [vmem:[#allocation7 + $0x48] sm:$0xff] %v144_v60  ;;  %v167_v61 = vpop.f32.mrf.mxu2  ;;  %v191_v62 = vpop.f32.mrf.mxu3 }
  0xb8   :  { %v168_v63 = vadd.f32 %v436_v48, %v167_v61  ;;  %v192_v0 = vadd.f32 %v436_v48, %v191_v62 }
  0xba   :  { %229 = vst [vmem:[#allocation7 + $0x88] sm:$0xff] %v168_v63 }
  0xbb   :  { %237 = vst [vmem:[#allocation7 + $0xc8] sm:$0xff] %v192_v0  ;;  %v122_v1 = vpop.f32.mrf.mxu0  ;;  %v146_v2 = vpop.f32.mrf.mxu1 }
  0xbc   :  { %v123_v3 = vadd.f32 %v436_v48, %v122_v1  ;;  %v147_v4 = vadd.f32 %v436_v48, %v146_v2 }
  0xbe   :  { %214 = vst [vmem:[#allocation7 + $0x10] sm:$0xff] %v123_v3 }
  0xbf   :  { %222 = vst [vmem:[#allocation7 + $0x50] sm:$0xff] %v147_v4  ;;  %v170_v5 = vpop.f32.mrf.mxu2  ;;  %v194_v6 = vpop.f32.mrf.mxu3 }
  0xc0   :  { %v171_v7 = vadd.f32 %v436_v48, %v170_v5  ;;  %v195_v8 = vadd.f32 %v436_v48, %v194_v6 }
  0xc2   :  { %230 = vst [vmem:[#allocation7 + $0x90] sm:$0xff] %v171_v7 }
  0xc3   :  { %238 = vst [vmem:[#allocation7 + $0xd0] sm:$0xff] %v195_v8  ;;  %v125_v9 = vpop.f32.mrf.mxu0  ;;  %v149_v10 = vpop.f32.mrf.mxu1 }
  0xc4   :  { %v126_v11 = vadd.f32 %v436_v48, %v125_v9  ;;  %v150_v12 = vadd.f32 %v436_v48, %v149_v10 }
  0xc6   :  { %215 = vst [vmem:[#allocation7 + $0x18] sm:$0xff] %v126_v11 }
  0xc7   :  { %223 = vst [vmem:[#allocation7 + $0x58] sm:$0xff] %v150_v12  ;;  %v173_v13 = vpop.f32.mrf.mxu2  ;;  %v197_v14 = vpop.f32.mrf.mxu3 }
  0xc8   :  { %v174_v15 = vadd.f32 %v436_v48, %v173_v13  ;;  %v198_v16 = vadd.f32 %v436_v48, %v197_v14 }
  0xca   :  { %231 = vst [vmem:[#allocation7 + $0x98] sm:$0xff] %v174_v15 }
  0xcb   :  { %239 = vst [vmem:[#allocation7 + $0xd8] sm:$0xff] %v198_v16  ;;  %v128_v17 = vpop.f32.mrf.mxu0  ;;  %v152_v18 = vpop.f32.mrf.mxu1 }
  0xcc   :  { %v129_v19 = vadd.f32 %v436_v48, %v128_v17  ;;  %v153_v20 = vadd.f32 %v436_v48, %v152_v18 }
  0xce   :  { %216 = vst [vmem:[#allocation7 + $0x20] sm:$0xff] %v129_v19 }
  0xcf   :  { %224 = vst [vmem:[#allocation7 + $0x60] sm:$0xff] %v153_v20  ;;  %v176_v21 = vpop.f32.mrf.mxu2  ;;  %v200_v22 = vpop.f32.mrf.mxu3 }
  0xd0   :  { %v177_v23 = vadd.f32 %v436_v48, %v176_v21  ;;  %v201_v24 = vadd.f32 %v436_v48, %v200_v22 }
  0xd2   :  { %232 = vst [vmem:[#allocation7 + $0xa0] sm:$0xff] %v177_v23 }
  0xd3   :  { %240 = vst [vmem:[#allocation7 + $0xe0] sm:$0xff] %v201_v24  ;;  %v131_v25 = vpop.f32.mrf.mxu0  ;;  %v155_v26 = vpop.f32.mrf.mxu1 }
  0xd4   :  { %v132_v27 = vadd.f32 %v436_v48, %v131_v25  ;;  %v156_v28 = vadd.f32 %v436_v48, %v155_v26 }
  0xd6   :  { %217 = vst [vmem:[#allocation7 + $0x28] sm:$0xff] %v132_v27 }
  0xd7   :  { %225 = vst [vmem:[#allocation7 + $0x68] sm:$0xff] %v156_v28  ;;  %v179_v29 = vpop.f32.mrf.mxu2  ;;  %v203_v30 = vpop.f32.mrf.mxu3 }
  0xd8   :  { %v180_v31 = vadd.f32 %v436_v48, %v179_v29  ;;  %v204_v32 = vadd.f32 %v436_v48, %v203_v30 }
  0xda   :  { %233 = vst [vmem:[#allocation7 + $0xa8] sm:$0xff] %v180_v31 }
  0xdb   :  { %241 = vst [vmem:[#allocation7 + $0xe8] sm:$0xff] %v204_v32  ;;  %v134_v33 = vpop.f32.mrf.mxu0  ;;  %v158_v34 = vpop.f32.mrf.mxu1 }
  0xdc   :  { %v135_v35 = vadd.f32 %v436_v48, %v134_v33  ;;  %v159_v36 = vadd.f32 %v436_v48, %v158_v34 }
  0xde   :  { %218 = vst [vmem:[#allocation7 + $0x30] sm:$0xff] %v135_v35 }
  0xdf   :  { %226 = vst [vmem:[#allocation7 + $0x70] sm:$0xff] %v159_v36  ;;  %v182_v37 = vpop.f32.mrf.mxu2  ;;  %v206_v38 = vpop.f32.mrf.mxu3 }
  0xe0   :  { %v183_v39 = vadd.f32 %v436_v48, %v182_v37  ;;  %v207_v40 = vadd.f32 %v436_v48, %v206_v38 }
  0xe2   :  { %234 = vst [vmem:[#allocation7 + $0xb0] sm:$0xff] %v183_v39 }
  0xe3   :  { %242 = vst [vmem:[#allocation7 + $0xf0] sm:$0xff] %v207_v40  ;;  %v137_v41 = vpop.f32.mrf.mxu0  ;;  %v161_v42 = vpop.f32.mrf.mxu1 }
  0xe4   :  { %v138_v43 = vadd.f32 %v436_v48, %v137_v41  ;;  %v162_v44 = vadd.f32 %v436_v48, %v161_v42 }
  0xe6   :  { %219 = vst [vmem:[#allocation7 + $0x38] sm:$0xff] %v138_v43 }
  0xe7   :  { %227 = vst [vmem:[#allocation7 + $0x78] sm:$0xff] %v162_v44  ;;  %v185_v45 = vpop.f32.mrf.mxu2  ;;  %v209_v46 = vpop.f32.mrf.mxu3 }
  0xe8   :  { %v186_v47 = vadd.f32 %v436_v48, %v185_v45  ;;  %v210_v49 = vadd.f32 %v436_v48, %v209_v46 }
  0xea   :  { %235 = vst [vmem:[#allocation7 + $0xb8] sm:$0xff] %v186_v47 }
  0xeb   :  { %243 = vst [vmem:[#allocation7 + $0xf8] sm:$0xff] %v210_v49 }
  0xec   :  { %256 = dma.vmem_to_hbm [thread:$0]  %s249_s24, 4096, %s251_s27, [#allocation4], %s397_s20, %s397_s20, %s398_s21  }
  0xed   :  { %394 = dma.done.wait [#allocation4], 4096  }
  0xee   :  { %395 = vsyncadd [#allocation4], 4294963200 }
  0xef   :  { %261 = vsyncpa [#allocation3], 1 }
  0xf0   :  { %262 = vsyncpa [#allocation6], 1 }
  0xf1   :  { %263 = vsyncpa [#allocation4], 1 }

</bundles_post_ra>
